<compile_context>
chip_gen: v7x
topology: tpu7x:2x2x1
jax: 0.10.0
libtpu: 0.0.40
codegen_flags: <defaults>
</compile_context>

<pallas_src>
import math
from functools import partial

import jax
import jax.numpy as jnp
from jax import lax
from jax.experimental import pallas as pl
from jax.experimental.pallas import tpu as pltpu


# ------------------------------ tiling helpers --------------------------------

def _pick_tile(dim, target, multiple):
    """Largest tile <= target that is a multiple of `multiple` and divides dim.

    Falls back to the full dimension (always a legal block shape).
    # TODO(synk): for large non-divisible dims, pad + mask instead of the
    # full-dimension fallback (full-dim blocks can blow the v7x VMEM budget).
    """
    if dim <= target:
        return dim
    cand = (target // multiple) * multiple
    while cand >= multiple:
        if dim % cand == 0:
            return cand
        cand -= multiple
    return dim


def _heads_per_block(num_heads, head_dim):
    """Heads per grid head-block so the block last dim is 128-lane aligned."""
    if head_dim % 128 == 0:
        return 1
    if 128 % head_dim == 0 and num_heads % (128 // head_dim) == 0:
        return 128 // head_dim
    return num_heads  # small-dim fallback: whole H*D block (== full last dim)


# --------------------------- tiled linear (matmul) ----------------------------

def _matmul_kernel(x_ref, w_ref, o_ref, acc_ref):
    # Grid: (M//tm, N//tn, K//tk); K is the innermost/"arbitrary" axis.
    @pl.when(pl.program_id(2) == 0)
    def _init():
        acc_ref[...] = jnp.zeros_like(acc_ref)

    # bf16 operands on the MXU, f32 accumulation.
    acc_ref[...] += jnp.dot(
        x_ref[...].astype(jnp.bfloat16),
        w_ref[...].astype(jnp.bfloat16),
        preferred_element_type=jnp.float32,
    )

    @pl.when(pl.program_id(2) == pl.num_programs(2) - 1)
    def _store():
        o_ref[...] = acc_ref[...].astype(o_ref.dtype)


def linear(x, w, *, tm=512, tn=256, tk=256):
    """x: (M, K), w: (K, N) -> (M, N), tiled + pipelined Pallas matmul."""
    M, K = x.shape
    K2, N = w.shape
    assert K == K2
    tm = _pick_tile(M, tm, 8)     # sublane-aligned
    tk = _pick_tile(K, tk, 128)   # lane-aligned (last dim of the x block)
    tn = _pick_tile(N, tn, 128)   # lane-aligned (last dim of the w / out block)
    grid = (M // tm, N // tn, K // tk)

    cost = pl.CostEstimate(
        flops=2 * M * N * K,
        transcendentals=0,
        bytes_accessed=(M * K + K * N + M * N) * x.dtype.itemsize,
    )
    return pl.pallas_call(
        _matmul_kernel,
        out_shape=jax.ShapeDtypeStruct((M, N), x.dtype),
        grid_spec=pltpu.PrefetchScalarGridSpec(
            num_scalar_prefetch=0,
            grid=grid,
            in_specs=[
                pl.BlockSpec((tm, tk), lambda i, j, k: (i, k)),
                pl.BlockSpec((tk, tn), lambda i, j, k: (k, j)),
            ],
            out_specs=pl.BlockSpec((tm, tn), lambda i, j, k: (i, j)),
            scratch_shapes=[pltpu.VMEM((tm, tn), jnp.float32)],
        ),
        compiler_params=pltpu.CompilerParams(
            dimension_semantics=("parallel", "parallel", "arbitrary"),
            vmem_limit_bytes=48 * 1024 * 1024,
        ),
        cost_estimate=cost,
    )(x, w)


# ----------------------- flash-style multi-head attention ---------------------

def _mha_flash_kernel(q_ref, k_ref, v_ref, o_ref, m_scr, l_scr, acc_scr,
                      *, heads_per_block, head_dim):
    D = head_dim
    ki = pl.program_id(3)

    @pl.when(ki == 0)
    def _init():
        m_scr[...] = jnp.full_like(m_scr, -jnp.inf)
        l_scr[...] = jnp.zeros_like(l_scr)
        acc_scr[...] = jnp.zeros_like(acc_scr)

    # Blocks carry `heads_per_block` heads; last dim stays 128-lane aligned.
    # The softmax scale is already folded into the Q projection weights.
    q = q_ref[0]   # (tq,  hpb*D)
    k = k_ref[0]   # (tkv, hpb*D)
    v = v_ref[0]   # (tkv, hpb*D)

    for h in range(heads_per_block):            # tiny static unroll (1-2 heads)
        cs = slice(h * D, (h + 1) * D)          # this head's lane columns
        hs = slice(h, h + 1)                    # this head's stats column
        qh = q[:, cs].astype(jnp.bfloat16)
        kh = k[:, cs].astype(jnp.bfloat16)
        # QK^T on the MXU with bf16 operands, f32 accumulation.
        s = lax.dot_general(qh, kh, (((1,), (1,)), ((), ())),
                            preferred_element_type=jnp.float32)       # (tq, tkv)
        m_prev = m_scr[:, hs]                                         # (tq, 1)
        m_new = jnp.maximum(m_prev, jnp.max(s, axis=-1, keepdims=True))
        alpha = jnp.exp(m_prev - m_new)                               # (tq, 1)
        p = jnp.exp(s - m_new)                                        # (tq, tkv) f32
        l_scr[:, hs] = alpha * l_scr[:, hs] + jnp.sum(p, axis=-1, keepdims=True)
        pv = jnp.dot(p.astype(jnp.bfloat16), v[:, cs].astype(jnp.bfloat16),
                     preferred_element_type=jnp.float32)              # (tq, D)
        acc_scr[:, cs] = alpha * acc_scr[:, cs] + pv
        m_scr[:, hs] = m_new

    @pl.when(ki == pl.num_programs(3) - 1)
    def _finalize():
        # In-place per-head rescale, then a single lane-dense full-tile store.
        for h in range(heads_per_block):
            cs = slice(h * D, (h + 1) * D)
            inv_l = pl.reciprocal(l_scr[:, h:h + 1], approx=True)     # EUP
            acc_scr[:, cs] = acc_scr[:, cs] * inv_l
        o_ref[0] = acc_scr[...].astype(o_ref.dtype)


def mha(q_src, k_src, v_src, *, num_heads, head_dim,
        q_col=0, k_col=0, v_col=0, tq=256, tkv=256):
    """Flash attention on (B, S, W) arrays; the projections live at lane
    offsets q_col/k_col/v_col (so fused QKV / KV arrays can be fed directly)."""
    B, Sq, Wq = q_src.shape
    _, Skv, Wk = k_src.shape
    _, _, Wv = v_src.shape
    D = head_dim
    dim_inner = num_heads * head_dim

    hpb = _heads_per_block(num_heads, head_dim)
    bl = hpb * D                        # lane width of one head-block
    HB = num_heads // hpb
    for col, W in ((q_col, Wq), (k_col, Wk), (v_col, Wv)):
        assert col % bl == 0 and col + dim_inner <= W
    qb0, kb0, vb0 = q_col // bl, k_col // bl, v_col // bl

    tq = _pick_tile(Sq, tq, 8)
    tkv = _pick_tile(Skv, tkv, 128)     # score-matrix lane dim: keep 128-aligned
    grid = (B, HB, Sq // tq, Skv // tkv)

    cost = pl.CostEstimate(
        flops=4 * B * num_heads * Sq * Skv * head_dim,
        transcendentals=B * num_heads * Sq * Skv,
        bytes_accessed=(B * (Sq + 2 * Skv + Sq) * dim_inner) * q_src.dtype.itemsize,
    )
    return pl.pallas_call(
        partial(_mha_flash_kernel, heads_per_block=hpb, head_dim=head_dim),
        out_shape=jax.ShapeDtypeStruct((B, Sq, dim_inner), q_src.dtype),
        grid_spec=pltpu.PrefetchScalarGridSpec(
            num_scalar_prefetch=0,
            grid=grid,
            in_specs=[
                pl.BlockSpec((1, tq, bl),
                             lambda b, hb, qi, ki: (b, qi, qb0 + hb)),
                pl.BlockSpec((1, tkv, bl),
                             lambda b, hb, qi, ki: (b, ki, kb0 + hb)),
                pl.BlockSpec((1, tkv, bl),
                             lambda b, hb, qi, ki: (b, ki, vb0 + hb)),
            ],
            out_specs=pl.BlockSpec((1, tq, bl),
                                   lambda b, hb, qi, ki: (b, qi, hb)),
            scratch_shapes=[
                pltpu.VMEM((tq, hpb), jnp.float32),   # running max  m
                pltpu.VMEM((tq, hpb), jnp.float32),   # running sum  l
                pltpu.VMEM((tq, bl), jnp.float32),    # un-normalized acc
            ],
        ),
        compiler_params=pltpu.CompilerParams(
            dimension_semantics=("parallel", "parallel", "parallel", "arbitrary"),
            vmem_limit_bytes=32 * 1024 * 1024,
        ),
        cost_estimate=cost,
    )(q_src, k_src, v_src)


# ------------------------------ Module wrapper --------------------------------

class Attention:
    """JAX/Pallas port of litesora.models.attention.Attention (bias-free defaults)."""

    def __init__(self, q_dim, num_heads, head_dim, kv_dim=None, key=None):
        dim_inner = head_dim * num_heads
        kv_dim = kv_dim if kv_dim is not None else q_dim
        self.num_heads = num_heads
        self.head_dim = head_dim
        self.q_dim = q_dim
        self.kv_dim = kv_dim
        self.dim_inner = dim_inner
        if key is None:
            key = jax.random.PRNGKey(0)
        kq, kk, kv, ko = jax.random.split(key, 4)
        # Deterministic synthetic weights, stored as (in_features, out_features).
        self.w_q = jax.random.normal(kq, (q_dim, dim_inner), jnp.float32) * 0.05
        self.w_k = jax.random.normal(kk, (kv_dim, dim_inner), jnp.float32) * 0.05
        self.w_v = jax.random.normal(kv, (kv_dim, dim_inner), jnp.float32) * 0.05
        self.w_o = jax.random.normal(ko, (dim_inner, q_dim), jnp.float32) * 0.05
        # Fold the softmax scale into the Q projection (free at param build).
        scale = 1.0 / math.sqrt(head_dim)
        self.w_q_scaled = self.w_q * scale
        # Fused QKV weight (self-attn) and fused KV weight (cross-attn): one
        # wide-N matmul reads the activations from HBM once.
        self.w_qkv_scaled = (
            jnp.concatenate([self.w_q_scaled, self.w_k, self.w_v], axis=1)
            if kv_dim == q_dim else None)
        self.w_kv = jnp.concatenate([self.w_k, self.w_v], axis=1)
        # TODO(synk): bias_q/bias_kv/bias_out paths omitted (module defaults are False).

    def __call__(self, hidden_states, encoder_hidden_states=None, attn_mask=None):
        if attn_mask is not None:
            # TODO(synk): attn_mask path not implemented (module default is None).
            raise NotImplementedError("attn_mask is not supported")
        self_attn = encoder_hidden_states is None
        if self_attn:
            encoder_hidden_states = hidden_states
        B, Sq, q_dim = hidden_states.shape
        _, Skv, kv_dim = encoder_hidden_states.shape
        H, D = self.num_heads, self.head_dim
        dim_inner = self.dim_inner
        aligned = (dim_inner % 128 == 0)

        x_q = hidden_states.reshape(B * Sq, q_dim)
        if self_attn and self.w_qkv_scaled is not None:
            qkv = linear(x_q, self.w_qkv_scaled).reshape(B, Sq, 3 * dim_inner)
            if aligned:
                # Feed the fused QKV array straight into the attention kernel;
                # the BlockSpec lane offsets do the Q/K/V split (no XLA slices).
                o = mha(qkv, qkv, qkv, num_heads=H, head_dim=D,
                        q_col=0, k_col=dim_inner, v_col=2 * dim_inner)
            else:
                q = qkv[..., :dim_inner]
                k = qkv[..., dim_inner:2 * dim_inner]
                v = qkv[..., 2 * dim_inner:]
                o = mha(q, k, v, num_heads=H, head_dim=D)
        else:
            x_kv = encoder_hidden_states.reshape(B * Skv, kv_dim)
            q = linear(x_q, self.w_q_scaled).reshape(B, Sq, dim_inner)
            kv = linear(x_kv, self.w_kv).reshape(B, Skv, 2 * dim_inner)
            if aligned:
                o = mha(q, kv, kv, num_heads=H, head_dim=D,
                        q_col=0, k_col=0, v_col=dim_inner)
            else:
                k = kv[..., :dim_inner]
                v = kv[..., dim_inner:]
                o = mha(q, k, v, num_heads=H, head_dim=D)

        out = linear(o.reshape(B * Sq, dim_inner), self.w_o)
        return out.reshape(B, Sq, q_dim)


# Pure-JAX f32 reference for validation (mirrors the torch module).
def reference_attention(attn: Attention, x, enc=None):
    if enc is None:
        enc = x
    B, Sq, _ = x.shape
    Skv = enc.shape[1]
    H, D = attn.num_heads, attn.head_dim
    q = (x @ attn.w_q).reshape(B, Sq, H, D).transpose(0, 2, 1, 3)
    k = (enc @ attn.w_k).reshape(B, Skv, H, D).transpose(0, 2, 1, 3)
    v = (enc @ attn.w_v).reshape(B, Skv, H, D).transpose(0, 2, 1, 3)
    s = jnp.einsum("bhqd,bhkd->bhqk", q, k) / math.sqrt(D)
    p = jax.nn.softmax(s, axis=-1)
    o = jnp.einsum("bhqk,bhkd->bhqd", p, v)
    o = o.transpose(0, 2, 1, 3).reshape(B, Sq, H * D)
    return o @ attn.w_o


def _check(name, out, ref, atol=2e-2, rtol=2e-2):
    # bf16 MXU operands (f32 accumulation) -> small drift vs. the f32 reference.
    assert out.shape == ref.shape, f"{name}: shape mismatch {out.shape} vs {ref.shape}"
    assert jnp.allclose(out, ref, atol=atol, rtol=rtol), (
        f"{name}: max abs err {jnp.max(jnp.abs(out - ref))}")


if __name__ == "__main__":
    key = jax.random.PRNGKey(0)
    k_param, k_x, k_enc, k_param2, k_x2, k_enc2 = jax.random.split(key, 6)

    # --- small smoke test (exercises the sub-128-lane fallback paths) ---------
    B, S, S_kv, q_dim = 2, 8, 16, 32
    num_heads, head_dim = 4, 8
    attn = Attention(q_dim=q_dim, num_heads=num_heads, head_dim=head_dim, key=k_param)
    x = jax.random.normal(k_x, (B, S, q_dim), jnp.float32)
    enc = jax.random.normal(k_enc, (B, S_kv, q_dim), jnp.float32)

    out_self = jax.block_until_ready(attn(x))
    _check("small self-attn", out_self, reference_attention(attn, x))
    out_cross = jax.block_until_ready(attn(x, enc))
    _check("small cross-attn", out_cross, reference_attention(attn, x, enc))

    # --- lane-aligned test (exercises the fused-QKV/KV direct path, head grid,
    #     128-aligned tiles and multi-step online softmax) ----------------------
    B2, S2, S2_kv, q_dim2 = 2, 256, 384, 256
    num_heads2, head_dim2 = 2, 128
    attn2 = Attention(q_dim=q_dim2, num_heads=num_heads2, head_dim=head_dim2, key=k_param2)
    x2 = jax.random.normal(k_x2, (B2, S2, q_dim2), jnp.float32)
    enc2 = jax.random.normal(k_enc2, (B2, S2_kv, q_dim2), jnp.float32)

    out_self2 = jax.block_until_ready(attn2(x2))
    _check("aligned self-attn", out_self2, reference_attention(attn2, x2))
    out_cross2 = jax.block_until_ready(attn2(x2, enc2))
    _check("aligned cross-attn", out_cross2, reference_attention(attn2, x2, enc2))

    print("KERNEL_OK")
</pallas_src>

<mosaic_0001>
module attributes {stable_mosaic.version = 11 : i64} {
  func.func @_matmul_kernel(%arg0: i32, %arg1: i32, %arg2: i32, %arg3: memref<16x32xf32, #tpu.memory_space<vmem>>, %arg4: memref<32x96xf32, #tpu.memory_space<vmem>>, %arg5: memref<16x96xf32, #tpu.memory_space<vmem>>, %arg6: memref<16x96xf32, #tpu.memory_space<vmem>>) attributes {dimension_semantics = [#tpu.dimension_semantics<parallel>, #tpu.dimension_semantics<parallel>, #tpu.dimension_semantics<arbitrary>], iteration_bounds = array<i64: 1, 1, 1>, scalar_prefetch = 0 : i64, scratch_operands = 1 : i64, tpu.core_type = #tpu.core_type<tc>, window_params = [{transform_indices = @transform_0, window_bounds = array<i64: 16, 32>}, {transform_indices = @transform_1, window_bounds = array<i64: 32, 96>}, {transform_indices = @transform_2, window_bounds = array<i64: 16, 96>}]} {
    %c0_i32 = arith.constant 0 : i32
    %0 = arith.cmpi eq, %arg2, %c0_i32 : i32
    %1 = arith.extui %0 : i1 to i32
    %c0_i32_0 = arith.constant 0 : i32
    %2 = arith.cmpi ne, %1, %c0_i32_0 : i32
    scf.if %2 {
      %cst_10 = arith.constant 0.000000e+00 : f32
      %14 = vector.broadcast %cst_10 : f32 to vector<16x96xf32>
      %c0_11 = arith.constant 0 : index
      %c0_12 = arith.constant 0 : index
      %15 = vector.load %arg6[%c0_11, %c0_12] : memref<16x96xf32, #tpu.memory_space<vmem>>, vector<16x96xf32>
      tpu.vector_store %arg6[%c0_11, %c0_12], %14 {strides = array<i32>} : memref<16x96xf32, #tpu.memory_space<vmem>>, vector<16x96xf32>,
    } else {
    }
    %c0 = arith.constant 0 : index
    %c0_1 = arith.constant 0 : index
    %3 = vector.load %arg6[%c0, %c0_1] : memref<16x96xf32, #tpu.memory_space<vmem>>, vector<16x96xf32>
    %c0_2 = arith.constant 0 : index
    %c0_3 = arith.constant 0 : index
    %4 = vector.load %arg3[%c0_2, %c0_3] : memref<16x32xf32, #tpu.memory_space<vmem>>, vector<16x32xf32>
    %5 = arith.truncf %4 : vector<16x32xf32> to vector<16x32xbf16>
    %c0_4 = arith.constant 0 : index
    %c0_5 = arith.constant 0 : index
    %6 = vector.load %arg4[%c0_4, %c0_5] : memref<32x96xf32, #tpu.memory_space<vmem>>, vector<32x96xf32>
    %7 = arith.truncf %6 : vector<32x96xf32> to vector<32x96xbf16>
    %cst = arith.constant dense<0.000000e+00> : vector<16x96xf32>
    %8 = tpu.matmul %5, %7, %cst {dimension_numbers = #tpu.dot_dimension_numbers<[1], [0], [0], [1], [0, 0, 1, 1], [], []>} : vector<16x32xbf16>, vector<32x96xbf16>, vector<16x96xf32> -> vector<16x96xf32>
    %9 = arith.addf %3, %8 : vector<16x96xf32>
    %c0_6 = arith.constant 0 : index
    %c0_7 = arith.constant 0 : index
    %10 = vector.load %arg6[%c0_6, %c0_7] : memref<16x96xf32, #tpu.memory_space<vmem>>, vector<16x96xf32>
    tpu.vector_store %arg6[%c0_6, %c0_7], %9 {strides = array<i32>} : memref<16x96xf32, #tpu.memory_space<vmem>>, vector<16x96xf32>,
    %c0_i32_8 = arith.constant 0 : i32
    %11 = arith.cmpi eq, %arg2, %c0_i32_8 : i32
    %12 = arith.extui %11 : i1 to i32
    %c0_i32_9 = arith.constant 0 : i32
    %13 = arith.cmpi ne, %12, %c0_i32_9 : i32
    scf.if %13 {
      %c0_10 = arith.constant 0 : index
      %c0_11 = arith.constant 0 : index
      %14 = vector.load %arg6[%c0_10, %c0_11] : memref<16x96xf32, #tpu.memory_space<vmem>>, vector<16x96xf32>
      %c0_12 = arith.constant 0 : index
      %c0_13 = arith.constant 0 : index
      %15 = vector.load %arg5[%c0_12, %c0_13] : memref<16x96xf32, #tpu.memory_space<vmem>>, vector<16x96xf32>
      tpu.vector_store %arg5[%c0_12, %c0_13], %14 {strides = array<i32>} : memref<16x96xf32, #tpu.memory_space<vmem>>, vector<16x96xf32>,
    } else {
    }
    return
  }
  func.func @transform_0(%arg0: i32, %arg1: i32, %arg2: i32) -> (i32, i32) {
    %c0_i32 = arith.constant 0 : i32
    return %arg0, %arg2 : i32, i32
  }
  func.func @transform_1(%arg0: i32, %arg1: i32, %arg2: i32) -> (i32, i32) {
    %c0_i32 = arith.constant 0 : i32
    return %arg2, %arg1 : i32, i32
  }
  func.func @transform_2(%arg0: i32, %arg1: i32, %arg2: i32) -> (i32, i32) {
    %c0_i32 = arith.constant 0 : i32
    return %arg0, %arg1 : i32, i32
  }
}

</mosaic_0001>

<bundles_post_ra>
// kernel: tpu_custom_call.1
= control target key start
LH: loop header
LB: loop body
LE: loop exit
PB: predicated region body
PF: predicated region fallthrough
CT: control target
= control target key end

     0   :  { %7 = vsyncpa [#allocation4], 0  ;;  %s298_s0 = inlined_call_operand.hbm [shape: f32[16,32], index: 0, kind: input, shape index: {}]   ;;  %s299_s1 = inlined_call_operand.hbm [shape: f32[32,96], index: 1, kind: input, shape index: {}]   ;;  %s300_s2 = inlined_call_operand.hbm [shape: f32[16,96], index: 2, kind: output, shape index: {}]  }
   0x1   :  { %8 = vsyncpa [#allocation7], 0 }
   0x2   :  { %9 = vsyncpa [#allocation5], 0  ;;  %s225_s9 = smov [#allocation3]   ;;  %s153_s13 = scalar_lea.hbm %s298_s0, 256 }
   0x3   :  { %s15_s10 = sshll.u32 %s225_s9, 4  ;;  %p154_p0 = scmp.ne.s32.totalorder %s298_s0, %s153_s13  ;;  %s16_s10 = int_to_ptr.vmem [resolvable:$true] %s15_s10 }
   0x4   :  { %p157_p1 = scmp.lt.u32.totalorder %s153_s13, %s298_s0 }
   0x6   :  { %p159_p2 = pnand %p157_p1, %p154_p0 }
   0x8   :  { %162 = shalt.err (!%p159_p2)
}
   0x9   :  { %s163_s18 = scalar_lea.vmem %s16_s10, 256  ;;  %p168_p4 = scmp.lt.s32.totalorder %s16_s10, %s16_s10 }
   0xa   :  { %p164_p3 = scmp.ne.s32.totalorder %s16_s10, %s163_s18  ;;  %p169_p5 = scmp.lt.s32.totalorder %s163_s18, %s163_s18 }
   0xc   :  { %p170_p6 = por %p169_p5, %p168_p4 }
   0xe   :  { %p171_p7 = pnand %p170_p6, %p164_p3 }
  0x10   :  { %174 = shalt.err (!%p171_p7)
}
  0x11   :  { %s226_s19 = smov 128   ;;  %s227_s20 = smov 8  }
  0x12   :  { %21 = dma.hbm_to_vmem [thread:$0]  %s298_s0, 256, %s16_s10, [#allocation4], %s226_s19, %s226_s19, %s227_s20  }
  0x13   :  { %s228_s23 = smov [#allocation6]   ;;  %s175_s27 = scalar_lea.hbm %s299_s1, 512 }
  0x14   :  { %s27_s24 = sshll.u32 %s228_s23, 4  ;;  %p176_p8 = scmp.ne.s32.totalorder %s299_s1, %s175_s27  ;;  %s28_s24 = int_to_ptr.vmem [resolvable:$true] %s27_s24 }
  0x15   :  { %p179_p9 = scmp.lt.u32.totalorder %s175_s27, %s299_s1 }
  0x17   :  { %p181_p10 = pnand %p179_p9, %p176_p8 }
  0x19   :  { %184 = shalt.err (!%p181_p10)
}
  0x1a   :  { %s185_s4 = scalar_lea.vmem %s28_s24, 512  ;;  %p190_p12 = scmp.lt.s32.totalorder %s28_s24, %s28_s24 }
  0x1b   :  { %p186_p11 = scmp.ne.s32.totalorder %s28_s24, %s185_s4  ;;  %p191_p13 = scmp.lt.s32.totalorder %s185_s4, %s185_s4 }
  0x1d   :  { %p192_p0 = por %p191_p13, %p190_p12 }
  0x1f   :  { %p193_p1 = pnand %p192_p0, %p186_p11 }
  0x21   :  { %196 = shalt.err (!%p193_p1)
}
  0x22   :  { %33 = dma.hbm_to_vmem [thread:$0]  %s299_s1, 512, %s28_s24, [#allocation7], %s226_s19, %s226_s19, %s227_s20  }
  0x23   :  { %219 = dma.done.wait [#allocation4], 256  }
  0x24   :  { %220 = vsyncadd [#allocation4], 4294967040 }
  0x25   :  { %221 = dma.done.wait [#allocation7], 512  }
  0x26   :  { %222 = vsyncadd [#allocation7], 4294966784  ;;  %vm45_vm0 = vcmask 785408   ;;  %v229_v0 = vmov 0.0   ;;  %vm230_vm1 = vmmov 0   ;;  %v53_v1 = vld [vmem:[#allocation6] sm:$0xff] }
  0x27   :  { %46 = vst.msk [vmem:[#allocation2] sm:$0xff] %vm45_vm0, %v229_v0  ;;  %47 = vst.msk [vmem:[#allocation2 + $0x8] sm:$0xff] %vm45_vm0, %v229_v0  ;;  %138 = vmatprep.subr.bf16.mxu0 %v229_v0  ;;  %142 = vmatprep.mubr.msk.bf16.mxu0 %vm230_vm1, %v229_v0  ;;  %v54_v2 = vld [vmem:[#allocation6 + $0x8] sm:$0xff]  ;;  %v55_v3 = vld [vmem:[#allocation6 + $0x10] sm:$0xff]  ;;  %vm59_vm2 = vcmask 261120   ;;  %s231_s1 = smov [#allocation8]  }
  0x28   :  { %v57_v4 = vpack.c.bf16 %v54_v2, %v53_v1  ;;  %v56_v5 = vld [vmem:[#allocation6 + $0x18] sm:$0xff]  ;;  %v50_v7 = vld [vmem:[#allocation3] sm:$0xff]  ;;  %s121_s6 = sshll.u32 %s231_s1, 4  ;;  %s122_s6 = int_to_ptr.vmem [resolvable:$true] %s121_s6 }
  0x29   :  { %v58_v6 = vpack.c.bf16 %v56_v5, %v55_v3  ;;  %v51_v8 = vld [vmem:[#allocation3 + $0x8] sm:$0xff]  ;;  %s197_s7 = scalar_lea.vmem %s122_s6, 256  ;;  %p202_p3 = scmp.lt.s32.totalorder %s122_s6, %s122_s6 }
  0x2a   :  { %139 = vmatpush3.bf16.msra.mxu0 %v57_v4  ;;  %v52_v9 = vpack.c.bf16 %v51_v8, %v50_v7  ;;  %p198_p2 = scmp.ne.s32.totalorder %s122_s6, %s197_s7  ;;  %p203_p4 = scmp.lt.s32.totalorder %s197_s7, %s197_s7 }
  0x2b   :  { %140 = vmatprep.subr.bf16.mxu0 %v229_v0 }
  0x2c   :  { %p204_p5 = por %p203_p4, %p202_p3 }
  0x2e   :  { %141 = vmatpush3.bf16.msra.mxu0 %v58_v6  ;;  %v48_v10 = vld [vmem:[#allocation2] sm:$0xff]  ;;  %v49_v12 = vld [vmem:[#allocation2 + $0x8] sm:$0xff]  ;;  %p205_p6 = pnand %p204_p5, %p198_p2 }
  0x31   :  { %143 = vmatmul.mubr.msk.bf16.vlgmr.msra.gmra.mrb[0].mxu0 %vm59_vm2, %v52_v9 }
 0x104   :  { %v97_v11 = vpop.f32.mrb[0].mxu0 }
 0x105   :  { %v104_v13 = vadd.f32 %v97_v11, %v48_v10  ;;  %v144_v14 = vpop.f32.mrb[1].mxu0 }
 0x106   :  { %v100_v15 = vpop.f32.mrb[2].mxu0 }
 0x107   :  { %107 = vst.msk [vmem:[#allocation2] sm:$0xff] %vm45_vm0, %v104_v13  ;;  %v105_v16 = vadd.f32 %v100_v15, %v49_v12  ;;  %v145_v17 = vpop.f32.mrb[3].mxu0 }
 0x109   :  { %108 = vst.msk [vmem:[#allocation2 + $0x8] sm:$0xff] %vm45_vm0, %v105_v16 }
 0x10e   :  { %v112_v18 = vld [vmem:[#allocation2] sm:$0xff] }
 0x10f   :  { %114 = vst.msk [vmem:[#allocation8] sm:$0xff] %vm45_vm0, %v112_v18 }
 0x110   :  { %v113_v19 = vld [vmem:[#allocation2 + $0x8] sm:$0xff] }
 0x111   :  { %115 = vst.msk [vmem:[#allocation8 + $0x8] sm:$0xff] %vm45_vm0, %v113_v19 }
 0x112   :  { %208 = shalt.err (!%p205_p6)
}
 0x113   :  { %s209_s10 = scalar_lea.hbm %s300_s2, 256 }
 0x114   :  { %p210_p7 = scmp.ne.s32.totalorder %s300_s2, %s209_s10  ;;  %p213_p8 = scmp.lt.u32.totalorder %s209_s10, %s300_s2 }
 0x116   :  { %p215_p9 = pnand %p213_p8, %p210_p7 }
 0x118   :  { %218 = shalt.err (!%p215_p9)
}
 0x119   :  { %127 = dma.vmem_to_hbm [thread:$0]  %s122_s6, 256, %s300_s2, [#allocation5], %s226_s19, %s226_s19, %s227_s20  }
 0x11a   :  { %223 = dma.done.wait [#allocation5], 256  }
 0x11b   :  { %224 = vsyncadd [#allocation5], 4294967040 }
 0x11c   :  { %131 = vsyncpa [#allocation4], 1 }
 0x11d   :  { %132 = vsyncpa [#allocation7], 1 }
 0x11e   :  { %133 = vsyncpa [#allocation5], 1 }

</bundles_post_ra>
